<compile_context>
chip_gen: v6e
topology: v6e:2x2x1
jax: 0.10.0
libtpu: 0.0.40
codegen_flags: <defaults>
</compile_context>

<pallas_src>
import jax
import jax.numpy as jnp
from jax.experimental import pallas as pl
from jax.experimental.pallas import tpu as pltpu


def _round_up(n, m):
    return ((n + m - 1) // m) * m


def _num_tensorcores_per_chip():
    """Best-effort TC count per chip (v7x has 2; v5e/v6e have 1)."""
    try:
        kind = jax.devices()[0].device_kind.lower()
    except Exception:
        return 1
    return 2 if ("v7" in kind or "7x" in kind) else 1


def _mlp_kernel(x_ref, w1_ref, b1_ref, w2_ref, b2_ref, w3_ref, b3_ref, o_ref):
    # x arrives f32; cast to bf16 in VMEM right before the MXU (no wrapper pass).
    # Accumulation is f32 via preferred_element_type; bias add / ReLU stay f32
    # (valid on v5e whose VPU has no bf16 arithmetic).
    x = x_ref[...].astype(jnp.bfloat16)
    h1 = jnp.dot(x, w1_ref[...], preferred_element_type=jnp.float32) + b1_ref[...]
    h1 = jnp.maximum(h1, 0.0)
    h2 = (
        jnp.dot(h1.astype(jnp.bfloat16), w2_ref[...],
                preferred_element_type=jnp.float32)
        + b2_ref[...]
    )
    h2 = jnp.maximum(h2, 0.0)
    out = (
        jnp.dot(h2.astype(jnp.bfloat16), w3_ref[...],
                preferred_element_type=jnp.float32)
        + b3_ref[...]
    )
    o_ref[...] = out.astype(o_ref.dtype)


def direction_classifier_forward(x, params, *, tile_m=2048, vmem_limit_bytes=None):
    """x: (B, input_dim) float32. params: dict w1,b1,w2,b2,w3,b3 (float32,
    weights stored (in, out) = transpose of PyTorch's (out, in)).

    Returns (B, num_classes) float32 logits.
    """
    w1, b1, w2, b2, w3, b3 = (params[k] for k in ("w1", "b1", "w2", "b2", "w3", "b3"))
    B, Din = x.shape
    H = w1.shape[1]
    C = w3.shape[1]

    # ---- lane-dense output: pad the last layer to a full 128-lane width ----
    C_pad = _round_up(max(C, 128), 128)
    if C_pad != C:
        w3 = jnp.pad(w3, ((0, 0), (0, C_pad - C)))   # padded cols are exactly 0
        b3 = jnp.pad(b3, ((0, 0), (0, C_pad - C)))

    # ---- batch tile selection ----
    tile = min(tile_m, _round_up(B, 8))
    tile = max(8, (tile // 8) * 8)
    ncores = _num_tensorcores_per_chip()
    if ncores >= 2 and B >= 16:
        # v7x: keep >= 2 grid steps so both TensorCores get work.
        tile = min(tile, max(8, (_round_up(B, 8) // ncores) // 8 * 8))
    Bp = _round_up(B, tile)
    if Bp != B:
        # Only triggers when B is not a multiple of the tile; padded rows are
        # zeros and get sliced off the result.
        x = jnp.pad(x, ((0, Bp - B), (0, 0)))

    # bf16 MXU operands for the (small, one-off) weight casts; x stays f32 and
    # is cast inside the kernel; biases stay f32.
    w1_bf = w1.astype(jnp.bfloat16)
    w2_bf = w2.astype(jnp.bfloat16)
    w3_bf = w3.astype(jnp.bfloat16)

    grid = (Bp // tile,)

    # Constant-index full-array blocks: DMA'd once, resident across all steps.
    def _resident(shape):
        return pl.BlockSpec(shape, lambda i: tuple(0 for _ in shape))

    flops = 2 * Bp * (Din * H + H * H + H * C_pad)
    bytes_accessed = (
        Bp * Din * 4                              # x (f32 in)
        + (Din * H + H * H + H * C_pad) * 2       # bf16 weights
        + (2 * H + C_pad) * 4                     # f32 biases
        + Bp * C_pad * 4                          # f32 lane-dense output
    )
    cost = pl.CostEstimate(flops=int(flops), transcendentals=0,
                           bytes_accessed=int(bytes_accessed))

    cp_kwargs = dict(dimension_semantics=("parallel",))
    if vmem_limit_bytes is not None:
        cp_kwargs["vmem_limit_bytes"] = int(vmem_limit_bytes)

    out = pl.pallas_call(
        _mlp_kernel,
        out_shape=jax.ShapeDtypeStruct((Bp, C_pad), jnp.float32),
        grid_spec=pl.GridSpec(
            grid=grid,
            in_specs=[
                pl.BlockSpec((tile, Din), lambda i: (i, 0)),  # x tile (streams)
                _resident((Din, H)),                           # w1
                _resident((1, H)),                             # b1
                _resident((H, H)),                             # w2
                _resident((1, H)),                             # b2
                _resident((H, C_pad)),                         # w3 (lane-padded)
                _resident((1, C_pad)),                         # b3 (lane-padded)
            ],
            out_specs=pl.BlockSpec((tile, C_pad), lambda i: (i, 0)),
        ),
        compiler_params=pltpu.CompilerParams(**cp_kwargs),
        cost_estimate=cost,
    )(x, w1_bf, b1, w2_bf, b2, w3_bf, b3)

    return out[:B, :C]


def init_params(key, input_dim, hidden_dim, num_classes):
    """Deterministic init mimicking nn.Linear default (uniform +-1/sqrt(fan_in))."""
    def linear(key, fan_in, fan_out):
        kw, kb = jax.random.split(key)
        bound = 1.0 / jnp.sqrt(fan_in)
        w = jax.random.uniform(kw, (fan_in, fan_out), jnp.float32, -bound, bound)
        b = jax.random.uniform(kb, (1, fan_out), jnp.float32, -bound, bound)
        return w, b

    k1, k2, k3 = jax.random.split(key, 3)
    w1, b1 = linear(k1, input_dim, hidden_dim)
    w2, b2 = linear(k2, hidden_dim, hidden_dim)
    w3, b3 = linear(k3, hidden_dim, num_classes)
    return {"w1": w1, "b1": b1, "w2": w2, "b2": b2, "w3": w3, "b3": b3}


def reference_forward(x, p):
    """JAX reference mirroring the kernel's quantization: bf16 MXU operands,
    f32 accumulation, f32 bias/ReLU."""
    xb = x.astype(jnp.bfloat16)
    h1 = jnp.maximum(
        jnp.dot(xb, p["w1"].astype(jnp.bfloat16), preferred_element_type=jnp.float32)
        + p["b1"],
        0.0,
    )
    h2 = jnp.maximum(
        jnp.dot(h1.astype(jnp.bfloat16), p["w2"].astype(jnp.bfloat16),
                preferred_element_type=jnp.float32)
        + p["b2"],
        0.0,
    )
    return (
        jnp.dot(h2.astype(jnp.bfloat16), p["w3"].astype(jnp.bfloat16),
                preferred_element_type=jnp.float32)
        + p["b3"]
    )


if __name__ == "__main__":
    key = jax.random.PRNGKey(0)
    kx, kp = jax.random.split(key)

    # Small demo shapes consistent with the module (hidden_dim matches the
    # PyTorch default of 256); tile auto-caps to the (8-aligned) batch.
    batch, input_dim, hidden_dim, num_classes = 8, 32, 256, 3

    x = jax.random.normal(kx, (batch, input_dim), dtype=jnp.float32)
    params = init_params(kp, input_dim, hidden_dim, num_classes)

    out = direction_classifier_forward(x, params)
    out = jax.block_until_ready(out)

    ref = reference_forward(x, params)
    assert out.shape == (batch, num_classes)
    # bf16 MXU operands -> relaxed tolerance vs the identically-quantized reference.
    assert jnp.allclose(out, ref, atol=2e-2, rtol=2e-2), "mismatch vs reference"

    print("KERNEL_OK")
</pallas_src>

<mosaic_0001>
module attributes {stable_mosaic.version = 11 : i64} {
  func.func @_mlp_kernel(%arg0: i32, %arg1: memref<8x32xf32, #tpu.memory_space<vmem>>, %arg2: memref<32x256xbf16, #tpu.memory_space<vmem>>, %arg3: memref<1x256xf32, #tpu.memory_space<vmem>>, %arg4: memref<256x256xbf16, #tpu.memory_space<vmem>>, %arg5: memref<1x256xf32, #tpu.memory_space<vmem>>, %arg6: memref<256x128xbf16, #tpu.memory_space<vmem>>, %arg7: memref<1x128xf32, #tpu.memory_space<vmem>>, %arg8: memref<8x128xf32, #tpu.memory_space<vmem>>) attributes {dimension_semantics = [#tpu.dimension_semantics<parallel>], iteration_bounds = array<i64: 1>, scalar_prefetch = 0 : i64, scratch_operands = 0 : i64, tpu.core_type = #tpu.core_type<tc>, window_params = [{transform_indices = @transform_0, window_bounds = array<i64: 8, 32>}, {pipeline_mode = #tpu.pipeline_mode<synchronous>, transform_indices = @transform_1, window_bounds = array<i64: 32, 256>}, {pipeline_mode = #tpu.pipeline_mode<synchronous>, transform_indices = @transform_2, window_bounds = array<i64: 1, 256>}, {pipeline_mode = #tpu.pipeline_mode<synchronous>, transform_indices = @transform_3, window_bounds = array<i64: 256, 256>}, {pipeline_mode = #tpu.pipeline_mode<synchronous>, transform_indices = @transform_4, window_bounds = array<i64: 1, 256>}, {pipeline_mode = #tpu.pipeline_mode<synchronous>, transform_indices = @transform_5, window_bounds = array<i64: 256, 128>}, {pipeline_mode = #tpu.pipeline_mode<synchronous>, transform_indices = @transform_6, window_bounds = array<i64: 1, 128>}, {transform_indices = @transform_7, window_bounds = array<i64: 8, 128>}]} {
    %c0 = arith.constant 0 : index
    %c0_0 = arith.constant 0 : index
    %0 = vector.load %arg1[%c0, %c0_0] : memref<8x32xf32, #tpu.memory_space<vmem>>, vector<8x32xf32>
    %1 = arith.truncf %0 : vector<8x32xf32> to vector<8x32xbf16>
    %c0_1 = arith.constant 0 : index
    %c0_2 = arith.constant 0 : index
    %2 = vector.load %arg2[%c0_1, %c0_2] : memref<32x256xbf16, #tpu.memory_space<vmem>>, vector<32x256xbf16>
    %cst = arith.constant dense<0.000000e+00> : vector<8x256xf32>
    %3 = tpu.matmul %1, %2, %cst {dimension_numbers = #tpu.dot_dimension_numbers<[1], [0], [0], [1], [0, 0, 1, 1], [], []>} : vector<8x32xbf16>, vector<32x256xbf16>, vector<8x256xf32> -> vector<8x256xf32>
    %c0_3 = arith.constant 0 : index
    %c0_4 = arith.constant 0 : index
    %4 = vector.load %arg3[%c0_3, %c0_4] : memref<1x256xf32, #tpu.memory_space<vmem>>, vector<1x256xf32>
    %5 = vector.broadcast %4 : vector<1x256xf32> to vector<8x256xf32>
    %6 = arith.addf %3, %5 : vector<8x256xf32>
    %cst_5 = arith.constant 0.000000e+00 : f32
    %7 = vector.broadcast %cst_5 : f32 to vector<8x256xf32>
    %8 = arith.maximumf %6, %7 : vector<8x256xf32>
    %9 = arith.truncf %8 : vector<8x256xf32> to vector<8x256xbf16>
    %c0_6 = arith.constant 0 : index
    %c0_7 = arith.constant 0 : index
    %10 = vector.load %arg4[%c0_6, %c0_7] : memref<256x256xbf16, #tpu.memory_space<vmem>>, vector<256x256xbf16>
    %cst_8 = arith.constant dense<0.000000e+00> : vector<8x256xf32>
    %11 = tpu.matmul %9, %10, %cst_8 {dimension_numbers = #tpu.dot_dimension_numbers<[1], [0], [0], [1], [0, 0, 1, 1], [], []>} : vector<8x256xbf16>, vector<256x256xbf16>, vector<8x256xf32> -> vector<8x256xf32>
    %c0_9 = arith.constant 0 : index
    %c0_10 = arith.constant 0 : index
    %12 = vector.load %arg5[%c0_9, %c0_10] : memref<1x256xf32, #tpu.memory_space<vmem>>, vector<1x256xf32>
    %13 = vector.broadcast %12 : vector<1x256xf32> to vector<8x256xf32>
    %14 = arith.addf %11, %13 : vector<8x256xf32>
    %cst_11 = arith.constant 0.000000e+00 : f32
    %15 = vector.broadcast %cst_11 : f32 to vector<8x256xf32>
    %16 = arith.maximumf %14, %15 : vector<8x256xf32>
    %17 = arith.truncf %16 : vector<8x256xf32> to vector<8x256xbf16>
    %c0_12 = arith.constant 0 : index
    %c0_13 = arith.constant 0 : index
    %18 = vector.load %arg6[%c0_12, %c0_13] : memref<256x128xbf16, #tpu.memory_space<vmem>>, vector<256x128xbf16>
    %cst_14 = arith.constant dense<0.000000e+00> : vector<8x128xf32>
    %19 = tpu.matmul %17, %18, %cst_14 {dimension_numbers = #tpu.dot_dimension_numbers<[1], [0], [0], [1], [0, 0, 1, 1], [], []>} : vector<8x256xbf16>, vector<256x128xbf16>, vector<8x128xf32> -> vector<8x128xf32>
    %c0_15 = arith.constant 0 : index
    %c0_16 = arith.constant 0 : index
    %20 = vector.load %arg7[%c0_15, %c0_16] : memref<1x128xf32, #tpu.memory_space<vmem>>, vector<1x128xf32>
    %21 = vector.broadcast %20 : vector<1x128xf32> to vector<8x128xf32>
    %22 = arith.addf %19, %21 : vector<8x128xf32>
    %c0_17 = arith.constant 0 : index
    %c0_18 = arith.constant 0 : index
    %23 = vector.load %arg8[%c0_17, %c0_18] : memref<8x128xf32, #tpu.memory_space<vmem>>, vector<8x128xf32>
    tpu.vector_store %arg8[%c0_17, %c0_18], %22 {strides = array<i32>} : memref<8x128xf32, #tpu.memory_space<vmem>>, vector<8x128xf32>,
    return
  }
  func.func @transform_0(%arg0: i32) -> (i32, i32) {
    %c0_i32 = arith.constant 0 : i32
    %c0_i32_0 = arith.constant 0 : i32
    return %arg0, %c0_i32 : i32, i32
  }
  func.func @transform_1(%arg0: i32) -> (i32, i32) {
    %c0_i32 = arith.constant 0 : i32
    %c0_i32_0 = arith.constant 0 : i32
    %c0_i32_1 = arith.constant 0 : i32
    return %c0_i32, %c0_i32_0 : i32, i32
  }
  func.func @transform_2(%arg0: i32) -> (i32, i32) {
    %c0_i32 = arith.constant 0 : i32
    %c0_i32_0 = arith.constant 0 : i32
    %c0_i32_1 = arith.constant 0 : i32
    return %c0_i32, %c0_i32_0 : i32, i32
  }
  func.func @transform_3(%arg0: i32) -> (i32, i32) {
    %c0_i32 = arith.constant 0 : i32
    %c0_i32_0 = arith.constant 0 : i32
    %c0_i32_1 = arith.constant 0 : i32
    return %c0_i32, %c0_i32_0 : i32, i32
  }
  func.func @transform_4(%arg0: i32) -> (i32, i32) {
    %c0_i32 = arith.constant 0 : i32
    %c0_i32_0 = arith.constant 0 : i32
    %c0_i32_1 = arith.constant 0 : i32
    return %c0_i32, %c0_i32_0 : i32, i32
  }
  func.func @transform_5(%arg0: i32) -> (i32, i32) {
    %c0_i32 = arith.constant 0 : i32
    %c0_i32_0 = arith.constant 0 : i32
    %c0_i32_1 = arith.constant 0 : i32
    return %c0_i32, %c0_i32_0 : i32, i32
  }
  func.func @transform_6(%arg0: i32) -> (i32, i32) {
    %c0_i32 = arith.constant 0 : i32
    %c0_i32_0 = arith.constant 0 : i32
    %c0_i32_1 = arith.constant 0 : i32
    return %c0_i32, %c0_i32_0 : i32, i32
  }
  func.func @transform_7(%arg0: i32) -> (i32, i32) {
    %c0_i32 = arith.constant 0 : i32
    %c0_i32_0 = arith.constant 0 : i32
    return %arg0, %c0_i32 : i32, i32
  }
}

</mosaic_0001>

<bundles_post_ra>
// kernel: tpu_custom_call.1
= control target key start
LH: loop header
LB: loop body
LE: loop exit
PB: predicated region body
PF: predicated region fallthrough
CT: control target
= control target key end

     0   :  { %12 = vsyncpa [#allocation3], 0  ;;  %s948_s0 = inlined_call_operand.hbm [shape: f32[8,32], index: 0, kind: input, shape index: {}]   ;;  %s949_s1 = inlined_call_operand.hbm [shape: bf16[32,256], index: 1, kind: input, shape index: {}]   ;;  %s950_s2 = inlined_call_operand.vmem [shape: f32[1,256], index: 2, kind: input, shape index: {}]   ;;  %s951_s3 = inlined_call_operand.hbm [shape: bf16[256,256], index: 3, kind: input, shape index: {}]   ;;  %s952_s4 = inlined_call_operand.vmem [shape: f32[1,256], index: 4, kind: input, shape index: {}]   ;;  %s953_s5 = inlined_call_operand.hbm [shape: bf16[256,128], index: 5, kind: input, shape index: {}]   ;;  %s954_s6 = inlined_call_operand.vmem [shape: f32[1,128], index: 6, kind: input, shape index: {}]   ;;  %s955_s7 = inlined_call_operand.hbm [shape: f32[8,128], index: 7, kind: output, shape index: {}]  }
   0x1   :  { %13 = vsyncpa [#allocation6], 0 }
   0x2   :  { %14 = vsyncpa [#allocation9], 0 }
   0x3   :  { %15 = vsyncpa [#allocation4], 0  ;;  %s874_s24 = smov [#allocation5]  }
   0x4   :  { %s31_s25 = sshll.u32 %s874_s24, 4  ;;  %s32_s25 = int_to_ptr.vmem [resolvable:$true] %s31_s25 }
   0x5   :  { %s774_s26 = scalar_lea.vmem %s32_s25, 512  ;;  %p779_p1 = scmp.lt.s32.totalorder %s32_s25, %s32_s25 }
   0x6   :  { %p775_p0 = scmp.ne.s32.totalorder %s32_s25, %s774_s26  ;;  %p780_p2 = scmp.lt.s32.totalorder %s774_s26, %s774_s26 }
   0x8   :  { %p781_p3 = por %p780_p2, %p779_p1 }
   0xa   :  { %p782_p4 = pnand %p781_p3, %p775_p0 }
   0xc   :  { %785 = shalt.err (!%p782_p4)
}
   0xd   :  { %s875_s27 = smov 128   ;;  %s876_s28 = smov 8  }
   0xe   :  { %37 = dma.hbm_to_vmem [thread:$0]  %s949_s1, 512, %s32_s25, [#allocation6], %s875_s27, %s875_s27, %s876_s28  }
   0xf   :  { %s877_s8 = smov [#allocation2]   ;;  %s878_s10 = smov [#allocation7]  }
  0x10   :  { %s22_s9 = sshll.u32 %s877_s8, 4  ;;  %s45_s11 = sshll.u32 %s878_s10, 4  ;;  %s23_s9 = int_to_ptr.vmem [resolvable:$true] %s22_s9  ;;  %s46_s11 = int_to_ptr.vmem [resolvable:$true] %s45_s11 }
  0x11   :  { %s794_s12 = scalar_lea.vmem %s23_s9, 128  ;;  %p799_p6 = scmp.lt.s32.totalorder %s23_s9, %s23_s9 }
  0x12   :  { %p795_p5 = scmp.ne.s32.totalorder %s23_s9, %s794_s12  ;;  %p800_p7 = scmp.lt.s32.totalorder %s794_s12, %s794_s12 }
  0x14   :  { %p801_p8 = por %p800_p7, %p799_p6 }
  0x16   :  { %p802_p9 = pnand %p801_p8, %p795_p5 }
  0x18   :  { %805 = shalt.err (!%p802_p9)
}
  0x19   :  { %25 = dma.hbm_to_vmem [thread:$0]  %s948_s0, 128, %s23_s9, [#allocation3]  }
  0x1a   :  { %s814_s15 = scalar_lea.vmem %s46_s11, 4096  ;;  %p819_p11 = scmp.lt.s32.totalorder %s46_s11, %s46_s11 }
  0x1b   :  { %p815_p10 = scmp.ne.s32.totalorder %s46_s11, %s814_s15  ;;  %p820_p12 = scmp.lt.s32.totalorder %s814_s15, %s814_s15 }
  0x1d   :  { %p821_p13 = por %p820_p12, %p819_p11 }
  0x1f   :  { %p822_p0 = pnand %p821_p13, %p815_p10 }
  0x21   :  { %825 = shalt.err (!%p822_p0)
}
  0x22   :  { %51 = dma.hbm_to_vmem [thread:$0]  %s951_s3, 4096, %s46_s11, [#allocation6], %s875_s27, %s875_s27, %s876_s28  }
  0x23   :  { %s879_s17 = smov [#allocation8]  }
  0x24   :  { %s59_s18 = sshll.u32 %s879_s17, 4  ;;  %s60_s18 = int_to_ptr.vmem [resolvable:$true] %s59_s18 }
  0x25   :  { %s834_s19 = scalar_lea.vmem %s60_s18, 2048  ;;  %p839_p2 = scmp.lt.s32.totalorder %s60_s18, %s60_s18 }
  0x26   :  { %p835_p1 = scmp.ne.s32.totalorder %s60_s18, %s834_s19  ;;  %p840_p3 = scmp.lt.s32.totalorder %s834_s19, %s834_s19 }
  0x28   :  { %p841_p4 = por %p840_p3, %p839_p2 }
  0x2a   :  { %p842_p5 = pnand %p841_p4, %p835_p1 }
  0x2c   :  { %845 = shalt.err (!%p842_p5)
}
  0x2d   :  { %s880_s0 = smov 64   ;;  %s881_s20 = smov 4  }
  0x2e   :  { %65 = dma.hbm_to_vmem [thread:$0]  %s953_s5, 2048, %s60_s18, [#allocation9], %s880_s0, %s880_s0, %s881_s20  }
  0x2f   :  { %866 = dma.done.wait [#allocation3], 128  }
  0x30   :  { %867 = vsyncadd [#allocation3], 4294967168 }
  0x31   :  { %868 = dma.done.wait [#allocation6], 4608  }
  0x32   :  { %869 = vsyncadd [#allocation6], 4294962688 }
  0x33   :  { %870 = dma.done.wait [#allocation9], 2048  }
  0x34   :  { %871 = vsyncadd [#allocation9], 4294965248  ;;  %v882_v0 = vmov 0   ;;  %v696_v1 = vld [vmem:[#allocation5 + $0x14] ss:$8 sps:$4 sm:$0xff]   ;;  %vm119_vm0 = vcmask 261120   ;;  %v89_v51 = vlaneseq }
  0x35   :  { %155 = vmatprep.mubr.bf16.mxu0 %v882_v0  ;;  %v698_v2 = vld [vmem:[#allocation5 + $0x10] ss:$8 sps:$4 sm:$0xff]   ;;  %135 = vmatprep.subr.bf16.mxu0 %v696_v1  ;;  %v699_v3 = vld [vmem:[#allocation5 + $0x4] ss:$8 sps:$4 sm:$0xff]   ;;  %v701_v4 = vld [vmem:[#allocation5] ss:$8 sps:$4 sm:$0xff]  }
  0x36   :  { %v81_v5 = vld [vmem:[#allocation2] sm:$0xff]  ;;  %136 = vmatpush1.bf16.msra.mxu0 %v698_v2  ;;  %v705_v8 = vld [vmem:[#allocation7 + $0x64] ss:$8 sps:$4 sm:$0xff]   ;;  %v707_v10 = vld [vmem:[#allocation7 + $0x60] ss:$8 sps:$4 sm:$0xff]   ;;  %v90_v52 = vshrl.u32 %v89_v51, 7 }
  0x37   :  { %v702_v6 = vld [vmem:[#allocation7 + $0x74] ss:$8 sps:$4 sm:$0xff]   ;;  %137 = vmatprep.subr.bf16.mxu0 %v699_v3  ;;  %v704_v7 = vld [vmem:[#allocation7 + $0x70] ss:$8 sps:$4 sm:$0xff]   ;;  %v82_v9 = vpack.c.bf16 %v81_v5, %v81_v5  ;;  %v711_v13 = vld [vmem:[#allocation7 + $0x44] ss:$8 sps:$4 sm:$0xff]  }
  0x38   :  { %372 = vmatprep.subr.bf16.mxu1 %v702_v6  ;;  %v708_v11 = vld [vmem:[#allocation7 + $0x54] ss:$8 sps:$4 sm:$0xff]   ;;  %v710_v12 = vld [vmem:[#allocation7 + $0x50] ss:$8 sps:$4 sm:$0xff]   ;;  %v713_v14 = vld [vmem:[#allocation7 + $0x40] ss:$8 sps:$4 sm:$0xff]  }
  0x39   :  { %373 = vmatpush1.bf16.msra.mxu1 %v704_v7  ;;  %v714_v15 = vld [vmem:[#allocation7 + $0x34] ss:$8 sps:$4 sm:$0xff]   ;;  %v716_v16 = vld [vmem:[#allocation7 + $0x30] ss:$8 sps:$4 sm:$0xff]   ;;  %v717_v17 = vld [vmem:[#allocation7 + $0x24] ss:$8 sps:$4 sm:$0xff]  }
  0x3a   :  { %138 = vmatpush1.bf16.msra.mxu0 %v701_v4  ;;  %374 = vmatprep.subr.bf16.mxu1 %v705_v8  ;;  %v719_v18 = vld [vmem:[#allocation7 + $0x20] ss:$8 sps:$4 sm:$0xff]   ;;  %v720_v19 = vld [vmem:[#allocation7 + $0x14] ss:$8 sps:$4 sm:$0xff]   ;;  %v722_v20 = vld [vmem:[#allocation7 + $0x10] ss:$8 sps:$4 sm:$0xff]  }
  0x3b   :  { %v723_v21 = vld [vmem:[#allocation7 + $0x4] ss:$8 sps:$4 sm:$0xff]   ;;  %v725_v22 = vld [vmem:[#allocation7] ss:$8 sps:$4 sm:$0xff]   ;;  %v726_v23 = vld [vmem:[#allocation7 + $0xf4] ss:$8 sps:$4 sm:$0xff]  }
  0x3c   :  { %v728_v24 = vld [vmem:[#allocation7 + $0xf0] ss:$8 sps:$4 sm:$0xff]   ;;  %v729_v25 = vld [vmem:[#allocation7 + $0xe4] ss:$8 sps:$4 sm:$0xff]   ;;  %v731_v26 = vld [vmem:[#allocation7 + $0xe0] ss:$8 sps:$4 sm:$0xff]  }
  0x3d   :  { %614 = vmatmul.mubr.msk.bf16.vlgmr.msra.gmra.mxu0 %vm119_vm0, %v82_v9  ;;  %375 = vmatpush1.bf16.msra.mxu1 %v707_v10  ;;  %v732_v27 = vld [vmem:[#allocation7 + $0xd4] ss:$8 sps:$4 sm:$0xff]   ;;  %v734_v28 = vld [vmem:[#allocation7 + $0xd0] ss:$8 sps:$4 sm:$0xff]   ;;  %v735_v29 = vld [vmem:[#allocation7 + $0xc4] ss:$8 sps:$4 sm:$0xff]  }
  0x3e   :  { %376 = vmatprep.subr.bf16.mxu1 %v708_v11  ;;  %v737_v30 = vld [vmem:[#allocation7 + $0xc0] ss:$8 sps:$4 sm:$0xff]   ;;  %v738_v31 = vld [vmem:[#allocation7 + $0xb4] ss:$8 sps:$4 sm:$0xff]   ;;  %v740_v32 = vld [vmem:[#allocation7 + $0xb0] ss:$8 sps:$4 sm:$0xff]  }
  0x3f   :  { %v741_v33 = vld [vmem:[#allocation7 + $0xa4] ss:$8 sps:$4 sm:$0xff]   ;;  %v743_v34 = vld [vmem:[#allocation7 + $0xa0] ss:$8 sps:$4 sm:$0xff]   ;;  %v744_v35 = vld [vmem:[#allocation7 + $0x94] ss:$8 sps:$4 sm:$0xff]  }
  0x40   :  { %v746_v36 = vld [vmem:[#allocation7 + $0x90] ss:$8 sps:$4 sm:$0xff]   ;;  %v747_v37 = vld [vmem:[#allocation7 + $0x84] ss:$8 sps:$4 sm:$0xff]   ;;  %v749_v38 = vld [vmem:[#allocation7 + $0x80] ss:$8 sps:$4 sm:$0xff]  }
  0x41   :  { %377 = vmatpush1.bf16.msra.mxu1 %v710_v12  ;;  %v750_v39 = vld [vmem:[#allocation8 + $0x78] sm:$0xff]   ;;  %v752_v41 = vld [vmem:[#allocation8 + $0x70] sm:$0xff]   ;;  %v754_v43 = vld [vmem:[#allocation8 + $0x68] sm:$0xff]   ;;  %v91_v53 = vsub.s32 0, %v90_v52  ;;  %v95_v55 = vsub.s32 1, %v90_v52 }
  0x42   :  { %378 = vmatprep.subr.bf16.mxu1 %v711_v13  ;;  %v751_v40 = vld [vmem:[#allocation8 + $0x38] sm:$0xff]   ;;  %664 = vmatprep.subr.bf16.mxu0 %v750_v39  ;;  %v753_v42 = vld [vmem:[#allocation8 + $0x30] sm:$0xff]   ;;  %v755_v44 = vld [vmem:[#allocation8 + $0x28] sm:$0xff]  }
  0x43   :  { %665 = vmatpush3.bf16.msra.mxu0 %v751_v40  ;;  %v756_v45 = vld [vmem:[#allocation8 + $0x60] sm:$0xff]   ;;  %v758_v47 = vld [vmem:[#allocation8 + $0x58] sm:$0xff]   ;;  %v760_v49 = vld [vmem:[#allocation8 + $0x50] sm:$0xff]  }
  0x44   :  { %666 = vmatprep.subr.bf16.mxu0 %v752_v41  ;;  %v757_v46 = vld [vmem:[#allocation8 + $0x20] sm:$0xff]   ;;  %v759_v48 = vld [vmem:[#allocation8 + $0x18] sm:$0xff]   ;;  %v761_v50 = vld [vmem:[#allocation8 + $0x10] sm:$0xff]  }
  0x45   :  { %379 = vmatpush1.bf16.msra.mxu1 %v713_v14  ;;  %v87_v54 = vld [vmem:[%s950_s2] sm:$0x3]  ;;  %v762_v4 = vld [vmem:[#allocation8 + $0x48] sm:$0xff]   ;;  %v764_v6 = vld [vmem:[#allocation8 + $0x40] sm:$0xff]  }
  0x46   :  { %380 = vmatprep.subr.bf16.mxu1 %v714_v15  ;;  %v92_v56 = vrot.slane %v87_v54, %v91_v53  ;;  %v96_v57 = vrot.slane %v87_v54, %v95_v55  ;;  %v763_v5 = vld [vmem:[#allocation8 + $0x8] sm:$0xff]   ;;  %v765_v7 = vld [vmem:[#allocation8] sm:$0xff]   ;;  %v200_v8 = vld [vmem:[%s952_s4] sm:$0x3]  ;;  %s883_s4 = smov [#allocation10]  }
  0x47   :  { %667 = vmatpush3.bf16.msra.mxu0 %v753_v42  ;;  %v205_v9 = vrot.slane %v200_v8, %v91_v53  ;;  %v209_v10 = vrot.slane %v200_v8, %v95_v55  ;;  %s599_s26 = sshll.u32 %s883_s4, 4  ;;  %s600_s26 = int_to_ptr.vmem [resolvable:$true] %s599_s26 }
  0x48   :  { %668 = vmatprep.subr.bf16.mxu0 %v754_v43  ;;  %s846_s27 = scalar_lea.vmem %s600_s26, 128  ;;  %p851_p7 = scmp.lt.s32.totalorder %s600_s26, %s600_s26 }
  0x49   :  { %381 = vmatpush1.bf16.msra.mxu1 %v716_v16  ;;  %p847_p6 = scmp.ne.s32.totalorder %s600_s26, %s846_s27  ;;  %p852_p8 = scmp.lt.s32.totalorder %s846_s27, %s846_s27 }
  0x4a   :  { %382 = vmatprep.subr.bf16.mxu1 %v717_v17 }
  0x4b   :  { %669 = vmatpush3.bf16.msra.mxu0 %v755_v44  ;;  %p853_p9 = por %p852_p8, %p851_p7 }
  0x4c   :  { %670 = vmatprep.subr.bf16.mxu0 %v756_v45 }
  0x4d   :  { %383 = vmatpush1.bf16.msra.mxu1 %v719_v18  ;;  %p854_p10 = pnand %p853_p9, %p847_p6 }
  0x4e   :  { %384 = vmatprep.subr.bf16.mxu1 %v720_v19 }
  0x4f   :  { %671 = vmatpush3.bf16.msra.mxu0 %v757_v46 }
  0x50   :  { %672 = vmatprep.subr.bf16.mxu0 %v758_v47 }
  0x51   :  { %385 = vmatpush1.bf16.msra.mxu1 %v722_v20 }
  0x52   :  { %386 = vmatprep.subr.bf16.mxu1 %v723_v21 }
  0x53   :  { %673 = vmatpush3.bf16.msra.mxu0 %v759_v48 }
  0x54   :  { %674 = vmatprep.subr.bf16.mxu0 %v760_v49 }
  0x55   :  { %387 = vmatpush1.bf16.msra.mxu1 %v725_v22  ;;  %v647_v22 = vld [vmem:[%s954_s6] ss:$0 sm:$0xff] }
  0x56   :  { %388 = vmatprep.subr.bf16.mxu1 %v726_v23 }
  0x57   :  { %675 = vmatpush3.bf16.msra.mxu0 %v761_v50 }
  0x58   :  { %676 = vmatprep.subr.bf16.mxu0 %v762_v4 }
  0x59   :  { %389 = vmatpush2.bf16.msra.mxu1 %v728_v24 }
  0x5a   :  { %390 = vmatprep.subr.bf16.mxu1 %v729_v25 }
  0x5b   :  { %677 = vmatpush3.bf16.msra.mxu0 %v763_v5 }
  0x5c   :  { %678 = vmatprep.subr.bf16.mxu0 %v764_v6 }
  0x5d   :  { %391 = vmatpush2.bf16.msra.mxu1 %v731_v26 }
  0x5e   :  { %392 = vmatprep.subr.bf16.mxu1 %v732_v27 }
  0x5f   :  { %679 = vmatpush3.bf16.msra.mxu0 %v765_v7 }
  0x61   :  { %393 = vmatpush2.bf16.msra.mxu1 %v734_v28 }
  0x62   :  { %394 = vmatprep.subr.bf16.mxu1 %v735_v29 }
  0x65   :  { %395 = vmatpush2.bf16.msra.mxu1 %v737_v30 }
  0x66   :  { %396 = vmatprep.subr.bf16.mxu1 %v738_v31 }
  0x69   :  { %397 = vmatpush2.bf16.msra.mxu1 %v740_v32 }
  0x6a   :  { %398 = vmatprep.subr.bf16.mxu1 %v741_v33 }
  0x6d   :  { %399 = vmatpush2.bf16.msra.mxu1 %v743_v34 }
  0x6e   :  { %400 = vmatprep.subr.bf16.mxu1 %v744_v35 }
  0x71   :  { %401 = vmatpush2.bf16.msra.mxu1 %v746_v36 }
  0x72   :  { %402 = vmatprep.subr.bf16.mxu1 %v747_v37 }
  0x75   :  { %403 = vmatpush2.bf16.msra.mxu1 %v749_v38 }
  0xfd   :  { %v157_v58 = vpop.f32.mrf.mxu0 }
  0xfe   :  { %v158_v59 = vadd.f32 %v157_v58, %v92_v56 }
  0xff   :  { %v159_v60 = vpop.f32.mrf.mxu0 }
 0x100   :  { %v160_v61 = vadd.f32 %v159_v60, %v96_v57  ;;  %v164_v62 = vmax.f32 %v158_v59, 0.0 }
 0x101   :  { %v161_v63 = vpop.f32.mrf.mxu0 }
 0x102   :  { %v165_v0 = vmax.f32 %v160_v61, 0.0  ;;  %v166_v3 = vpack.c.bf16 %v164_v62, %v164_v62 }
 0x103   :  { %v162_v1 = vpop.f32.mrf.mxu0 }
 0x104   :  { %v167_v2 = vpack.c.bf16 %v165_v0, %v165_v0 }
 0x106   :  { %404 = vmatprep.mubr.bf16.mxu1 %v167_v2 }
 0x107   :  { %405 = vmatmul.mubr.bf16.vlgmr.msra.gmra.mxu1 %v166_v3 }
 0x1c7   :  { %v406_v11 = vpop.f32.mrf.mxu1 }
 0x1c8   :  { %v407_v12 = vadd.f32 %v406_v11, %v205_v9 }
 0x1c9   :  { %v408_v13 = vpop.f32.mrf.mxu1 }
 0x1ca   :  { %v409_v14 = vadd.f32 %v408_v13, %v209_v10  ;;  %v413_v15 = vmax.f32 %v407_v12, 0.0 }
 0x1cb   :  { %v410_v16 = vpop.f32.mrf.mxu1 }
 0x1cc   :  { %v414_v17 = vmax.f32 %v409_v14, 0.0  ;;  %v415_v20 = vpack.c.bf16 %v413_v15, %v413_v15 }
 0x1cd   :  { %v411_v18 = vpop.f32.mrf.mxu1 }
 0x1ce   :  { %v416_v19 = vpack.c.bf16 %v414_v17, %v414_v17 }
 0x1d0   :  { %584 = vmatprep.mubr.bf16.mxu0 %v416_v19 }
 0x1d1   :  { %585 = vmatmul.mubr.bf16.vlgmr.msra.gmra.mxu0 %v415_v20 }
 0x291   :  { %v680_v21 = vpop.f32.mrf.mxu0 }
 0x293   :  { %v681_v23 = vpop.f32.mrf.mxu0 }
 0x294   :  { %v682_v24 = vadd.f32 %v681_v23, %v680_v21 }
 0x295   :  { %v683_v25 = vpop.f32.mrf.mxu0 }
 0x296   :  { %v587_v26 = vadd.f32 %v682_v24, %v647_v22 }
 0x297   :  { %v684_v27 = vpop.f32.mrf.mxu0 }
 0x298   :  { %592 = vst [vmem:[#allocation10] sm:$0xff] %v587_v26 }
 0x299   :  { %857 = shalt.err (!%p854_p10)
}
 0x29a   :  { %602 = dma.vmem_to_hbm [thread:$0]  %s600_s26, 128, %s955_s7, [#allocation4]  }
 0x29b   :  { %872 = dma.done.wait [#allocation4], 128  }
 0x29c   :  { %873 = vsyncadd [#allocation4], 4294967168 }
 0x29d   :  { %606 = vsyncpa [#allocation3], 1 }
 0x29e   :  { %607 = vsyncpa [#allocation6], 1 }
 0x29f   :  { %608 = vsyncpa [#allocation9], 1 }
 0x2a0   :  { %609 = vsyncpa [#allocation4], 1 }

</bundles_post_ra>
